<compile_context>
chip_gen: v7x
topology: tpu7x:2x2x1
jax: 0.10.0
libtpu: 0.0.40
codegen_flags: <defaults>
</compile_context>

<pallas_src>
import functools

import jax
import jax.numpy as jnp
from jax import lax
from jax.experimental import pallas as pl
from jax.experimental.pallas import tpu as pltpu


def _disc_kernel(x_ref, w1_ref, b1_ref, w2_ref, b2_ref, w3_ref, b3_ref,
                 o_ref, *, use_bf16):
    # One lane-dense batch tile per grid step; all three layers fused.
    cast = (lambda a: a.astype(jnp.bfloat16)) if use_bf16 else (lambda a: a)

    x = x_ref[...]                                            # (tile_b, D)

    # Layer 1: contract D of w1 (H, D) with D of x (tile_b, D) -> (H, tile_b).
    # The MXU does the "x transpose" for free; no HBM transpose needed.
    h1 = lax.dot_general(w1_ref[...], x,
                         dimension_numbers=(((1,), (1,)), ((), ())),
                         preferred_element_type=jnp.float32) + b1_ref[...]
    h1 = jnp.maximum(h1, 0.0)                                 # ReLU (f32, VPU)

    # Layer 2: (H, H) @ (H, tile_b) -> (H, tile_b).
    h2 = jnp.dot(w2_ref[...], cast(h1),
                 preferred_element_type=jnp.float32) + b2_ref[...]
    h2 = jnp.maximum(h2, 0.0)                                 # ReLU

    # Layer 3: (1, H) @ (H, tile_b) -> lane-dense (1, tile_b) logits row.
    logits = jnp.dot(w3_ref[...], cast(h2),
                     preferred_element_type=jnp.float32) + b3_ref[...]
    o_ref[...] = jax.nn.sigmoid(logits).astype(o_ref.dtype)   # Sigmoid (f32, EUP)


def _min_batch_splits():
    """2 on v7x (two TensorCores share the 'parallel' grid axis), else 1."""
    try:
        kind = jax.devices()[0].device_kind.lower()
        if "v7" in kind:
            return 2
    except Exception:
        pass
    return 1


def _pick_tile_b(b_pad, *, max_tile=8192, min_splits=1):
    """Largest 128-multiple divisor of b_pad, capped so VMEM stays small and
    so there are at least `min_splits` grid steps (v7x megacore split)."""
    cap = min(max_tile, b_pad // max(min_splits, 1))
    cap = (cap // 128) * 128
    for t in range(cap, 0, -128):
        if b_pad % t == 0:
            return t
    return b_pad                           # b_pad < 128*min_splits: single step


def discriminator_forward(x, params, *, tile_b=None, use_bf16_matmul=False):
    """x: (B, D) float32 -> (B, 1) float32 probabilities.

    params: torch-layout weights w{1,2,3}: (out, in); biases b1/b2: (H, 1),
    b3: (1, 1).
    """
    w1, b1, w2, b2, w3, b3 = (params[k] for k in ("w1", "b1", "w2", "b2", "w3", "b3"))
    B, D = x.shape

    # Pad batch to a multiple of 128 so every tile is lane-dense (unmasked
    # stores); padded rows are sliced off after the kernel.
    b_pad = ((B + 127) // 128) * 128
    if b_pad != B:
        x = jnp.pad(x, ((0, b_pad - B), (0, 0)))

    if tile_b is None:
        tile_b = _pick_tile_b(b_pad, min_splits=_min_batch_splits())
    assert b_pad % tile_b == 0
    n_steps = b_pad // tile_b

    if use_bf16_matmul:
        # Pre-cast ONCE in the wrapper: halves x's HBM bytes, no per-step
        # VPU casts of the weights inside the kernel.  Biases stay f32.
        x = x.astype(jnp.bfloat16)
        w1, w2, w3 = (w.astype(jnp.bfloat16) for w in (w1, w2, w3))

    # Weights / biases: whole-array blocks with constant index maps — Pallas
    # DMAs them once and keeps them resident across all grid steps.
    full = lambda arr: pl.BlockSpec(arr.shape, lambda i: (0,) * arr.ndim)

    out = pl.pallas_call(
        functools.partial(_disc_kernel, use_bf16=use_bf16_matmul),
        out_shape=jax.ShapeDtypeStruct((1, b_pad), jnp.float32),
        grid_spec=pltpu.PrefetchScalarGridSpec(
            num_scalar_prefetch=0,
            grid=(n_steps,),
            in_specs=[
                # x streams in natural (B, D) layout: batch on sublanes, the
                # small D on lanes (pads to 128 lanes in VMEM — trivially small).
                pl.BlockSpec((tile_b, D), lambda i: (i, 0)),
                full(w1), full(b1),
                full(w2), full(b2),
                full(w3), full(b3),
            ],
            out_specs=pl.BlockSpec((1, tile_b), lambda i: (0, i)),
        ),
        compiler_params=pltpu.CompilerParams(
            dimension_semantics=("parallel",),      # v7x: 2 TCs split the batch
            vmem_limit_bytes=32 * 1024 * 1024),
    )(x, w1, b1, w2, b2, w3, b3)

    # (1, b_pad) -> (b_pad, 1) is a pure reshape (no data movement), then slice
    # off padded rows.
    return out.reshape(b_pad, 1)[:B]


def init_params(key, input_dim, hidden_dim=128):
    """torch.nn.Linear-style U(-1/sqrt(fan_in), ...) init, torch (out,in) layout."""
    ks = jax.random.split(key, 6)

    def lin(kw, kb, fan_in, fan_out):
        bound = 1.0 / jnp.sqrt(float(fan_in))
        w = jax.random.uniform(kw, (fan_out, fan_in), jnp.float32, -bound, bound)
        b = jax.random.uniform(kb, (fan_out, 1), jnp.float32, -bound, bound)
        return w, b

    w1, b1 = lin(ks[0], ks[1], input_dim, hidden_dim)
    w2, b2 = lin(ks[2], ks[3], hidden_dim, hidden_dim)
    w3, b3 = lin(ks[4], ks[5], hidden_dim, 1)
    return {"w1": w1, "b1": b1, "w2": w2, "b2": b2, "w3": w3, "b3": b3}


def _reference_forward(x, p):
    h1 = jnp.maximum(x @ p["w1"].T + p["b1"].T, 0.0)
    h2 = jnp.maximum(h1 @ p["w2"].T + p["b2"].T, 0.0)
    return jax.nn.sigmoid(h2 @ p["w3"].T + p["b3"].T)


if __name__ == "__main__":
    key = jax.random.PRNGKey(0)
    k_x, k_p = jax.random.split(key)

    # Small shapes; B=500 exercises the pad-to-128 / slice path.
    B, D, H = 500, 16, 32
    x = jax.random.normal(k_x, (B, D), jnp.float32)
    params = init_params(k_p, D, H)

    out = discriminator_forward(x, params)        # f32 MXU path (exact check)
    out = jax.block_until_ready(out)

    ref = _reference_forward(x, params)
    assert out.shape == (B, 1)
    assert jnp.allclose(out, ref, atol=1e-5, rtol=1e-5), "mismatch vs. reference"

    print("KERNEL_OK")
</pallas_src>

<mosaic_0001>
module attributes {stable_mosaic.version = 11 : i64} {
  func.func @_disc_kernel(%arg0: i32, %arg1: memref<512x16xf32, #tpu.memory_space<vmem>>, %arg2: memref<32x16xf32, #tpu.memory_space<vmem>>, %arg3: memref<32x1xf32, #tpu.memory_space<vmem>>, %arg4: memref<32x32xf32, #tpu.memory_space<vmem>>, %arg5: memref<32x1xf32, #tpu.memory_space<vmem>>, %arg6: memref<1x32xf32, #tpu.memory_space<vmem>>, %arg7: memref<1x1xf32, #tpu.memory_space<vmem>>, %arg8: memref<1x512xf32, #tpu.memory_space<vmem>>) attributes {dimension_semantics = [#tpu.dimension_semantics<parallel>], iteration_bounds = array<i64: 1>, scalar_prefetch = 0 : i64, scratch_operands = 0 : i64, tpu.core_type = #tpu.core_type<tc>, window_params = [{transform_indices = @transform_0, window_bounds = array<i64: 512, 16>}, {pipeline_mode = #tpu.pipeline_mode<synchronous>, transform_indices = @transform_1, window_bounds = array<i64: 32, 16>}, {pipeline_mode = #tpu.pipeline_mode<synchronous>, transform_indices = @transform_2, window_bounds = array<i64: 32, 1>}, {pipeline_mode = #tpu.pipeline_mode<synchronous>, transform_indices = @transform_3, window_bounds = array<i64: 32, 32>}, {pipeline_mode = #tpu.pipeline_mode<synchronous>, transform_indices = @transform_4, window_bounds = array<i64: 32, 1>}, {pipeline_mode = #tpu.pipeline_mode<synchronous>, transform_indices = @transform_5, window_bounds = array<i64: 1, 32>}, {pipeline_mode = #tpu.pipeline_mode<synchronous>, transform_indices = @transform_6, window_bounds = array<i64: 1, 1>}, {transform_indices = @transform_7, window_bounds = array<i64: 1, 512>}]} {
    %c0 = arith.constant 0 : index
    %c0_0 = arith.constant 0 : index
    %0 = vector.load %arg1[%c0, %c0_0] : memref<512x16xf32, #tpu.memory_space<vmem>>, vector<512x16xf32>
    %c0_1 = arith.constant 0 : index
    %c0_2 = arith.constant 0 : index
    %1 = vector.load %arg2[%c0_1, %c0_2] : memref<32x16xf32, #tpu.memory_space<vmem>>, vector<32x16xf32>
    %cst = arith.constant dense<0.000000e+00> : vector<32x512xf32>
    %2 = tpu.matmul %1, %0, %cst {dimension_numbers = #tpu.dot_dimension_numbers<[1], [1], [0], [0], [0, 0, 1, 0], [], []>} : vector<32x16xf32>, vector<512x16xf32>, vector<32x512xf32> -> vector<32x512xf32>
    %c0_3 = arith.constant 0 : index
    %c0_4 = arith.constant 0 : index
    %3 = vector.load %arg3[%c0_3, %c0_4] : memref<32x1xf32, #tpu.memory_space<vmem>>, vector<32x1xf32>
    %4 = vector.broadcast %3 : vector<32x1xf32> to vector<32x512xf32>
    %5 = arith.addf %2, %4 : vector<32x512xf32>
    %cst_5 = arith.constant 0.000000e+00 : f32
    %6 = vector.broadcast %cst_5 : f32 to vector<32x512xf32>
    %7 = arith.maximumf %5, %6 : vector<32x512xf32>
    %c0_6 = arith.constant 0 : index
    %c0_7 = arith.constant 0 : index
    %8 = vector.load %arg4[%c0_6, %c0_7] : memref<32x32xf32, #tpu.memory_space<vmem>>, vector<32x32xf32>
    %cst_8 = arith.constant dense<0.000000e+00> : vector<32x512xf32>
    %9 = tpu.matmul %8, %7, %cst_8 {dimension_numbers = #tpu.dot_dimension_numbers<[1], [0], [0], [1], [0, 0, 1, 1], [], []>} : vector<32x32xf32>, vector<32x512xf32>, vector<32x512xf32> -> vector<32x512xf32>
    %c0_9 = arith.constant 0 : index
    %c0_10 = arith.constant 0 : index
    %10 = vector.load %arg5[%c0_9, %c0_10] : memref<32x1xf32, #tpu.memory_space<vmem>>, vector<32x1xf32>
    %11 = vector.broadcast %10 : vector<32x1xf32> to vector<32x512xf32>
    %12 = arith.addf %9, %11 : vector<32x512xf32>
    %cst_11 = arith.constant 0.000000e+00 : f32
    %13 = vector.broadcast %cst_11 : f32 to vector<32x512xf32>
    %14 = arith.maximumf %12, %13 : vector<32x512xf32>
    %c0_12 = arith.constant 0 : index
    %c0_13 = arith.constant 0 : index
    %15 = vector.load %arg6[%c0_12, %c0_13] : memref<1x32xf32, #tpu.memory_space<vmem>>, vector<1x32xf32>
    %cst_14 = arith.constant dense<0.000000e+00> : vector<1x512xf32>
    %16 = tpu.matmul %15, %14, %cst_14 {dimension_numbers = #tpu.dot_dimension_numbers<[1], [0], [0], [1], [0, 0, 1, 1], [], []>} : vector<1x32xf32>, vector<32x512xf32>, vector<1x512xf32> -> vector<1x512xf32>
    %c0_15 = arith.constant 0 : index
    %c0_16 = arith.constant 0 : index
    %17 = vector.load %arg7[%c0_15, %c0_16] : memref<1x1xf32, #tpu.memory_space<vmem>>, vector<1x1xf32>
    %18 = vector.broadcast %17 : vector<1x1xf32> to vector<1x512xf32>
    %19 = arith.addf %16, %18 : vector<1x512xf32>
    %20 = arith.negf %19 : vector<1x512xf32>
    %21 = math.exp %20 : vector<1x512xf32>
    %cst_17 = arith.constant 1.000000e+00 : f32
    %22 = vector.broadcast %cst_17 : f32 to vector<1x512xf32>
    %23 = arith.addf %22, %21 : vector<1x512xf32>
    %24 = arith.divf %22, %23 : vector<1x512xf32>
    %c0_18 = arith.constant 0 : index
    %c0_19 = arith.constant 0 : index
    %25 = vector.load %arg8[%c0_18, %c0_19] : memref<1x512xf32, #tpu.memory_space<vmem>>, vector<1x512xf32>
    tpu.vector_store %arg8[%c0_18, %c0_19], %24 {strides = array<i32>} : memref<1x512xf32, #tpu.memory_space<vmem>>, vector<1x512xf32>,
    return
  }
  func.func @transform_0(%arg0: i32) -> (i32, i32) {
    %c0_i32 = arith.constant 0 : i32
    %c0_i32_0 = arith.constant 0 : i32
    return %arg0, %c0_i32 : i32, i32
  }
  func.func @transform_1(%arg0: i32) -> (i32, i32) {
    %c0_i32 = arith.constant 0 : i32
    %c0_i32_0 = arith.constant 0 : i32
    %c0_i32_1 = arith.constant 0 : i32
    return %c0_i32, %c0_i32_0 : i32, i32
  }
  func.func @transform_2(%arg0: i32) -> (i32, i32) {
    %c0_i32 = arith.constant 0 : i32
    %c0_i32_0 = arith.constant 0 : i32
    %c0_i32_1 = arith.constant 0 : i32
    return %c0_i32, %c0_i32_0 : i32, i32
  }
  func.func @transform_3(%arg0: i32) -> (i32, i32) {
    %c0_i32 = arith.constant 0 : i32
    %c0_i32_0 = arith.constant 0 : i32
    %c0_i32_1 = arith.constant 0 : i32
    return %c0_i32, %c0_i32_0 : i32, i32
  }
  func.func @transform_4(%arg0: i32) -> (i32, i32) {
    %c0_i32 = arith.constant 0 : i32
    %c0_i32_0 = arith.constant 0 : i32
    %c0_i32_1 = arith.constant 0 : i32
    return %c0_i32, %c0_i32_0 : i32, i32
  }
  func.func @transform_5(%arg0: i32) -> (i32, i32) {
    %c0_i32 = arith.constant 0 : i32
    %c0_i32_0 = arith.constant 0 : i32
    %c0_i32_1 = arith.constant 0 : i32
    return %c0_i32, %c0_i32_0 : i32, i32
  }
  func.func @transform_6(%arg0: i32) -> (i32, i32) {
    %c0_i32 = arith.constant 0 : i32
    %c0_i32_0 = arith.constant 0 : i32
    %c0_i32_1 = arith.constant 0 : i32
    return %c0_i32, %c0_i32_0 : i32, i32
  }
  func.func @transform_7(%arg0: i32) -> (i32, i32) {
    %c0_i32 = arith.constant 0 : i32
    %c0_i32_0 = arith.constant 0 : i32
    return %c0_i32, %arg0 : i32, i32
  }
}

</mosaic_0001>

<bundles_post_ra>
// kernel: tpu_custom_call.1
= control target key start
LH: loop header
LB: loop body
LE: loop exit
PB: predicated region body
PF: predicated region fallthrough
CT: control target
= control target key end

     0   :  { %s1737_s0 = inlined_call_operand.vmem [shape: f32[512,16], index: 0, kind: input, shape index: {}]   ;;  %s1738_s1 = inlined_call_operand.vmem [shape: f32[32,16], index: 1, kind: input, shape index: {}]   ;;  %s1739_s2 = inlined_call_operand.vmem [shape: f32[32,1], index: 2, kind: input, shape index: {}]   ;;  %s1740_s3 = inlined_call_operand.vmem [shape: f32[32,32], index: 3, kind: input, shape index: {}]   ;;  %s1741_s4 = inlined_call_operand.vmem [shape: f32[32,1], index: 4, kind: input, shape index: {}]   ;;  %s1742_s5 = inlined_call_operand.vmem [shape: f32[1,32], index: 5, kind: input, shape index: {}]   ;;  %s1743_s6 = inlined_call_operand.<no memory space> [shape: f32[1,1], index: 6, kind: input, shape index: {}]   ;;  %s1744_s7 = inlined_call_operand.hbm [shape: f32[1,512], index: 7, kind: output, shape index: {}]  }
   0x1   :  { %v12_v0 = vstv %s1743_s6 }
   0x2   :  { %13 = vst [vmem:[#allocation2] sm:$0x1] %v12_v0 }
   0x3   :  { %v45_v1 = vld [vmem:[%s1737_s0 + $0x80] sm:$0xff]  ;;  %v46_v2 = vld [vmem:[%s1737_s0 + $0x88] sm:$0xff]  ;;  %vm121_vm0 = vcmask 130048   ;;  %v1323_v8 = vmov 0   ;;  %v47_v15 = vld [vmem:[%s1737_s0 + $0x90] sm:$0xff] }
   0x4   :  { %v77_v3 = vld [vmem:[%s1737_s0 + $0x180] sm:$0xff]  ;;  %v1149_v4 = vpack.c.bf16 %v46_v2, %v45_v1  ;;  %vm1381_vm1 = vmpackc.low %vm121_vm0, %vm121_vm0  ;;  %v78_v6 = vld [vmem:[%s1737_s0 + $0x188] sm:$0xff]  ;;  %1281 = vset.pattern.permute.xlu0 %v1323_v8  ;;  %1282 = vset.pattern.permute.xlu1 %v1323_v8 }
   0x5   :  { %v29_v7 = vld [vmem:[%s1737_s0] sm:$0xff]  ;;  %v1197_v9 = vpack.c.bf16 %v78_v6, %v77_v3  ;;  %v30_v10 = vld [vmem:[%s1737_s0 + $0x8] sm:$0xff]  ;;  %v48_v16 = vld [vmem:[%s1737_s0 + $0x98] sm:$0xff] }
   0x6   :  { %v61_v11 = vld [vmem:[%s1737_s0 + $0x100] sm:$0xff]  ;;  %v62_v12 = vld [vmem:[%s1737_s0 + $0x108] sm:$0xff]  ;;  %1151 = vmatprep.subr.msk.bf16.mxu0 %vm1381_vm1, %v1149_v4  ;;  %v1152_v13 = vpack.c.bf16 %v30_v10, %v29_v7  ;;  %v79_v17 = vld [vmem:[%s1737_s0 + $0x190] sm:$0xff]  ;;  %v1155_v18 = vpack.c.bf16 %v48_v16, %v47_v15 }
   0x7   :  { %v1200_v14 = vpack.c.bf16 %v62_v12, %v61_v11  ;;  %1199 = vmatprep.subr.msk.bf16.mxu1 %vm1381_vm1, %v1197_v9  ;;  %v80_v19 = vld [vmem:[%s1737_s0 + $0x198] sm:$0xff]  ;;  %v31_v21 = vld [vmem:[%s1737_s0 + $0x10] sm:$0xff]  ;;  %v49_v25 = vld [vmem:[%s1737_s0 + $0xa0] sm:$0xff] }
   0x8   :  { %1154 = vmatpush3.bf16.xpose.msk.msra.mxu0 %vm1381_vm1, %v1152_v13  ;;  %v1203_v20 = vpack.c.bf16 %v80_v19, %v79_v17  ;;  %v32_v22 = vld [vmem:[%s1737_s0 + $0x18] sm:$0xff]  ;;  %v63_v23 = vld [vmem:[%s1737_s0 + $0x110] sm:$0xff]  ;;  %v50_v26 = vld [vmem:[%s1737_s0 + $0xa8] sm:$0xff] }
   0x9   :  { %1202 = vmatpush3.bf16.xpose.msk.msra.mxu1 %vm1381_vm1, %v1200_v14  ;;  %1157 = vmatprep.subr.msk.bf16.mxu0 %vm1381_vm1, %v1155_v18  ;;  %v64_v24 = vld [vmem:[%s1737_s0 + $0x118] sm:$0xff]  ;;  %v81_v27 = vld [vmem:[%s1737_s0 + $0x1a0] sm:$0xff]  ;;  %v82_v28 = vld [vmem:[%s1737_s0 + $0x1a8] sm:$0xff]  ;;  %v1158_v29 = vpack.c.bf16 %v32_v22, %v31_v21  ;;  %v1161_v31 = vpack.c.bf16 %v50_v26, %v49_v25 }
   0xa   :  { %1205 = vmatprep.subr.msk.bf16.mxu1 %vm1381_vm1, %v1203_v20  ;;  %v1206_v30 = vpack.c.bf16 %v64_v24, %v63_v23  ;;  %v1209_v32 = vpack.c.bf16 %v82_v28, %v81_v27  ;;  %v33_v33 = vld [vmem:[%s1737_s0 + $0x20] sm:$0xff]  ;;  %v34_v34 = vld [vmem:[%s1737_s0 + $0x28] sm:$0xff]  ;;  %v51_v37 = vld [vmem:[%s1737_s0 + $0xb0] sm:$0xff] }
   0xb   :  { %v65_v35 = vld [vmem:[%s1737_s0 + $0x120] sm:$0xff]  ;;  %v66_v36 = vld [vmem:[%s1737_s0 + $0x128] sm:$0xff]  ;;  %v52_v38 = vld [vmem:[%s1737_s0 + $0xb8] sm:$0xff]  ;;  %v1164_v41 = vpack.c.bf16 %v34_v34, %v33_v33 }
   0xc   :  { %v83_v39 = vld [vmem:[%s1737_s0 + $0x1b0] sm:$0xff]  ;;  %v84_v40 = vld [vmem:[%s1737_s0 + $0x1b8] sm:$0xff]  ;;  %v1212_v42 = vpack.c.bf16 %v66_v36, %v65_v35  ;;  %v1167_v43 = vpack.c.bf16 %v52_v38, %v51_v37  ;;  %v1496_v48 = vld [vmem:[%s1738_s1] sm:$0xff] }
   0xd   :  { %v1215_v44 = vpack.c.bf16 %v84_v40, %v83_v39  ;;  %v35_v45 = vld [vmem:[%s1737_s0 + $0x30] sm:$0xff]  ;;  %v36_v46 = vld [vmem:[%s1737_s0 + $0x38] sm:$0xff]  ;;  %v53_v50 = vld [vmem:[%s1737_s0 + $0xc0] sm:$0xff]  ;;  %1101 = vmatprep.mubr.msk.f32.mxu0 %vm121_vm0, %v1496_v48  ;;  %1141 = vmatprep.mubr.msk.f32.mxu1 %vm121_vm0, %v1496_v48 }
   0xe   :  { %v67_v47 = vld [vmem:[%s1737_s0 + $0x130] sm:$0xff]  ;;  %v68_v49 = vld [vmem:[%s1737_s0 + $0x138] sm:$0xff]  ;;  %v54_v51 = vld [vmem:[%s1737_s0 + $0xc8] sm:$0xff]  ;;  %v1170_v56 = vpack.c.bf16 %v36_v46, %v35_v45 }
   0xf   :  { %v85_v52 = vld [vmem:[%s1737_s0 + $0x1c0] sm:$0xff]  ;;  %v86_v53 = vld [vmem:[%s1737_s0 + $0x1c8] sm:$0xff]  ;;  %v99_v55 = vld [vmem:[%s1739_s2 + $0x10] sm:$0xff]  ;;  %v1218_v57 = vpack.c.bf16 %v68_v49, %v67_v47  ;;  %v1173_v59 = vpack.c.bf16 %v54_v51, %v53_v50 }
  0x10   :  { %1160 = vmatpush3.bf16.xpose.msk.msra.mxu0 %vm1381_vm1, %v1158_v29  ;;  %v97_v54 = vld [vmem:[%s1739_s2] sm:$0xff]  ;;  %v98_v58 = vld [vmem:[%s1739_s2 + $0x8] sm:$0xff]  ;;  %113 = vperm.xlu1 %1282, %v99_v55   ;;  %v1221_v60 = vpack.c.bf16 %v86_v53, %v85_v52 }
  0x11   :  { %1208 = vmatpush3.bf16.xpose.msk.msra.mxu1 %vm1381_vm1, %v1206_v30  ;;  %1163 = vmatprep.subr.msk.bf16.mxu0 %vm1381_vm1, %v1161_v31 }
  0x12   :  { %1211 = vmatprep.subr.msk.bf16.mxu1 %vm1381_vm1, %v1209_v32  ;;  %103 = vperm.xlu0 %1281, %v97_v54  }
  0x18   :  { %1166 = vmatpush3.bf16.xpose.msk.msra.mxu0 %vm1381_vm1, %v1164_v41 }
  0x19   :  { %1214 = vmatpush3.bf16.xpose.msk.msra.mxu1 %vm1381_vm1, %v1212_v42  ;;  %1169 = vmatprep.subr.msk.bf16.mxu0 %vm1381_vm1, %v1167_v43 }
  0x1a   :  { %1217 = vmatprep.subr.msk.bf16.mxu1 %vm1381_vm1, %v1215_v44 }
  0x1b   :  { %14 = vsyncpa [#allocation4], 0  ;;  %108 = vperm.xlu0 %1281, %v98_v58   ;;  %v100_v61 = vld [vmem:[%s1739_s2 + $0x18] sm:$0xff]  ;;  %v37_v62 = vld [vmem:[%s1737_s0 + $0x40] sm:$0xff]  ;;  %vm548_vm2 = vcmask 261120  }
  0x1c   :  { %v38_v63 = vld [vmem:[%s1737_s0 + $0x48] sm:$0xff]  ;;  %v524_v0 = vld [vmem:[%s1741_s4] sm:$0xff]  ;;  %v55_v3 = vld [vmem:[%s1737_s0 + $0xd0] sm:$0xff]  ;;  %118 = vperm.xlu1 %1282, %v100_v61  }
  0x1d   :  { %v69_v1 = vld [vmem:[%s1737_s0 + $0x140] sm:$0xff]  ;;  %v70_v2 = vld [vmem:[%s1737_s0 + $0x148] sm:$0xff]  ;;  %v56_v4 = vld [vmem:[%s1737_s0 + $0xd8] sm:$0xff]  ;;  %v1176_v9 = vpack.c.bf16 %v38_v63, %v37_v62 }
  0x1e   :  { %v87_v6 = vld [vmem:[%s1737_s0 + $0x1d0] sm:$0xff]  ;;  %v88_v7 = vld [vmem:[%s1737_s0 + $0x1d8] sm:$0xff]  ;;  %v525_v8 = vld [vmem:[%s1741_s4 + $0x8] sm:$0xff]  ;;  %v1224_v10 = vpack.c.bf16 %v70_v2, %v69_v1  ;;  %v1179_v12 = vpack.c.bf16 %v56_v4, %v55_v3 }
  0x1f   :  { %530 = vperm.xlu0 %1281, %v524_v0   ;;  %v526_v11 = vld [vmem:[%s1741_s4 + $0x10] sm:$0xff]  ;;  %v1227_v13 = vpack.c.bf16 %v88_v7, %v87_v6  ;;  %v527_v14 = vld [vmem:[%s1741_s4 + $0x18] sm:$0xff]  ;;  %v756_v17 = vld [vmem:[#allocation2] sm:$0x1] }
  0x20   :  { %1172 = vmatpush3.bf16.xpose.msk.msra.mxu0 %vm1381_vm1, %v1170_v56  ;;  %535 = vperm.xlu1 %1282, %v525_v8   ;;  %v39_v15 = vld [vmem:[%s1737_s0 + $0x50] sm:$0xff]  ;;  %v40_v16 = vld [vmem:[%s1737_s0 + $0x58] sm:$0xff]  ;;  %v57_v20 = vld [vmem:[%s1737_s0 + $0xe0] sm:$0xff] }
  0x21   :  { %1220 = vmatpush3.bf16.xpose.msk.msra.mxu1 %vm1381_vm1, %v1218_v57  ;;  %1175 = vmatprep.subr.msk.bf16.mxu0 %vm1381_vm1, %v1173_v59  ;;  %v71_v18 = vld [vmem:[%s1737_s0 + $0x150] sm:$0xff]  ;;  %v72_v19 = vld [vmem:[%s1737_s0 + $0x158] sm:$0xff]  ;;  %v58_v21 = vld [vmem:[%s1737_s0 + $0xe8] sm:$0xff]  ;;  %v1182_v24 = vpack.c.bf16 %v40_v16, %v39_v15 }
  0x22   :  { %1223 = vmatprep.subr.msk.bf16.mxu1 %vm1381_vm1, %v1221_v60  ;;  %v89_v22 = vld [vmem:[%s1737_s0 + $0x1e0] sm:$0xff]  ;;  %v90_v23 = vld [vmem:[%s1737_s0 + $0x1e8] sm:$0xff]  ;;  %v1230_v25 = vpack.c.bf16 %v72_v19, %v71_v18  ;;  %v1185_v26 = vpack.c.bf16 %v58_v21, %v57_v20  ;;  %v59_v32 = vld [vmem:[%s1737_s0 + $0xf0] sm:$0xff] }
  0x23   :  { %540 = vperm.xlu0 %1281, %v526_v11   ;;  %v1233_v27 = vpack.c.bf16 %v90_v23, %v89_v22  ;;  %v41_v28 = vld [vmem:[%s1737_s0 + $0x60] sm:$0xff]  ;;  %v42_v29 = vld [vmem:[%s1737_s0 + $0x68] sm:$0xff]  ;;  %v60_v33 = vld [vmem:[%s1737_s0 + $0xf8] sm:$0xff] }
  0x24   :  { %545 = vperm.xlu1 %1282, %v527_v14   ;;  %v73_v30 = vld [vmem:[%s1737_s0 + $0x160] sm:$0xff]  ;;  %v74_v31 = vld [vmem:[%s1737_s0 + $0x168] sm:$0xff]  ;;  %v91_v34 = vld [vmem:[%s1737_s0 + $0x1f0] sm:$0xff]  ;;  %v1188_v36 = vpack.c.bf16 %v42_v29, %v41_v28  ;;  %v1191_v38 = vpack.c.bf16 %v60_v33, %v59_v32 }
  0x25   :  { %v92_v35 = vld [vmem:[%s1737_s0 + $0x1f8] sm:$0xff]  ;;  %v1236_v37 = vpack.c.bf16 %v74_v31, %v73_v30  ;;  %v43_v40 = vld [vmem:[%s1737_s0 + $0x70] sm:$0xff]  ;;  %v94_v46 = vld [vmem:[%s1738_s1 + $0x8] sm:$0xff] }
  0x26   :  { %v1239_v39 = vpack.c.bf16 %v92_v35, %v91_v34  ;;  %v44_v41 = vld [vmem:[%s1737_s0 + $0x78] sm:$0xff]  ;;  %v75_v42 = vld [vmem:[%s1737_s0 + $0x170] sm:$0xff] }
  0x27   :  { %759 = vperm.xlu0 %1281, %v756_v17   ;;  %v76_v43 = vld [vmem:[%s1737_s0 + $0x178] sm:$0xff]  ;;  %v1194_v44 = vpack.c.bf16 %v44_v41, %v43_v40  ;;  %v95_v47 = vld [vmem:[%s1738_s1 + $0x10] sm:$0xff] }
  0x28   :  { %1178 = vmatpush3.bf16.xpose.msk.msra.mxu0 %vm1381_vm1, %v1176_v9  ;;  %v1242_v45 = vpack.c.bf16 %v76_v43, %v75_v42  ;;  %v96_v5 = vld [vmem:[%s1738_s1 + $0x18] sm:$0xff] }
  0x29   :  { %1226 = vmatpush3.bf16.xpose.msk.msra.mxu1 %vm1381_vm1, %v1224_v10  ;;  %1181 = vmatprep.subr.msk.bf16.mxu0 %vm1381_vm1, %v1179_v12 }
  0x2a   :  { %1229 = vmatprep.subr.msk.bf16.mxu1 %vm1381_vm1, %v1227_v13 }
  0x30   :  { %1184 = vmatpush3.bf16.xpose.msk.msra.mxu0 %vm1381_vm1, %v1182_v24 }
  0x31   :  { %1232 = vmatpush3.bf16.xpose.msk.msra.mxu1 %vm1381_vm1, %v1230_v25  ;;  %1187 = vmatprep.subr.msk.bf16.mxu0 %vm1381_vm1, %v1185_v26 }
  0x32   :  { %1235 = vmatprep.subr.msk.bf16.mxu1 %vm1381_vm1, %v1233_v27 }
  0x38   :  { %1190 = vmatpush3.bf16.xpose.msk.msra.mxu0 %vm1381_vm1, %v1188_v36 }
  0x39   :  { %1238 = vmatpush3.bf16.xpose.msk.msra.mxu1 %vm1381_vm1, %v1236_v37  ;;  %1193 = vmatprep.subr.msk.bf16.mxu0 %vm1381_vm1, %v1191_v38 }
  0x3a   :  { %1241 = vmatprep.subr.msk.bf16.mxu1 %vm1381_vm1, %v1239_v39 }
  0x40   :  { %1196 = vmatpush3.bf16.xpose.msk.msra.mxu0 %vm1381_vm1, %v1194_v44 }
  0x41   :  { %1244 = vmatpush3.bf16.xpose.msk.msra.mxu1 %vm1381_vm1, %v1242_v45 }
  0x47   :  { %1102 = vmatmul.mubr.msk.f32.vlgmr.msra.gmra.mrb[0].mxu0 %vm121_vm0, %v1496_v48 }
  0x48   :  { %1142 = vmatmul.mubr.msk.f32.vlgmr.msra.gmra.mrb[0].mxu1 %vm121_vm0, %v1496_v48  ;;  %1103 = vmatprep.mubr.msk.f32.mxu0 %vm121_vm0, %v94_v46  ;;  %v1324_v48 = vmov 0.0  }
  0x49   :  { %1143 = vmatprep.mubr.msk.f32.mxu1 %vm121_vm0, %v94_v46 }
  0x4b   :  { %1104 = vmatmul.mubr.msk.f32.gmra.mrb[2].mxu0 %vm121_vm0, %v94_v46 }
  0x4c   :  { %1144 = vmatmul.mubr.msk.f32.gmra.mrb[2].mxu1 %vm121_vm0, %v94_v46  ;;  %1105 = vmatprep.mubr.msk.f32.mxu0 %vm121_vm0, %v95_v47  ;;  %v520_v46 = vld [vmem:[%s1740_s3] sm:$0xff] }
  0x4d   :  { %1145 = vmatprep.mubr.msk.f32.mxu1 %vm121_vm0, %v95_v47 }
  0x4f   :  { %1106 = vmatmul.mubr.msk.f32.gmra.mrb[4].mxu0 %vm121_vm0, %v95_v47 }
  0x50   :  { %1146 = vmatmul.mubr.msk.f32.gmra.mrb[4].mxu1 %vm121_vm0, %v95_v47  ;;  %1107 = vmatprep.mubr.msk.f32.mxu0 %vm121_vm0, %v96_v5  ;;  %v521_v47 = vld [vmem:[%s1740_s3 + $0x8] sm:$0xff] }
  0x51   :  { %1147 = vmatprep.mubr.msk.f32.mxu1 %vm121_vm0, %v96_v5 }
  0x53   :  { %1108 = vmatmul.mubr.msk.f32.gmra.mrb[6].mxu0 %vm121_vm0, %v96_v5 }
  0x54   :  { %1148 = vmatmul.mubr.msk.f32.gmra.mrb[6].mxu1 %vm121_vm0, %v96_v5  ;;  %625 = vmatprep.mubr.f32.mxu0 %v1324_v48  ;;  %v522_v5 = vld [vmem:[%s1740_s3 + $0x10] sm:$0xff] }
  0x55   :  { %714 = vmatprep.mubr.f32.mxu1 %v1324_v48 }
  0x8f   :  { %v114_v55 = vpop.permute.xlu1 %113 }
  0x91   :  { %v104_v49 = vpop.permute.xlu0 %103 }
  0x9a   :  { %v109_v54 = vpop.permute.xlu0 %108 }
  0x9b   :  { %v119_v21 = vpop.permute.xlu1 %118 }
 0x11a   :  { %v392_v50 = vpop.f32.mrb[0].mxu0 }
 0x11b   :  { %v481_v51 = vpop.f32.mrb[0].mxu1  ;;  %v394_v52 = vpop.f32.mrb[1].mxu0  ;;  %v393_v56 = vadd.f32 %v392_v50, %v104_v49 }
 0x11c   :  { %v483_v53 = vpop.f32.mrb[1].mxu1  ;;  %v482_v57 = vadd.f32 %v481_v51, %v104_v49  ;;  %v395_v58 = vadd.f32 %v394_v52, %v104_v49 }
 0x11d   :  { %v484_v59 = vadd.f32 %v483_v53, %v104_v49  ;;  %v504_v4 = vmax.f32 %v393_v56, 0.0  ;;  %v523_v49 = vld [vmem:[%s1740_s3 + $0x18] sm:$0xff] }
 0x11e   :  { %v398_v60 = vpop.f32.mrb[2].mxu0  ;;  %v506_v6 = vmax.f32 %v482_v57, 0.0  ;;  %v505_v9 = vmax.f32 %v395_v58, 0.0 }
 0x11f   :  { %v487_v61 = vpop.f32.mrb[2].mxu1  ;;  %v399_v62 = vadd.f32 %v398_v60, %v109_v54  ;;  %v400_v0 = vpop.f32.mrb[3].mxu0  ;;  %v507_v10 = vmax.f32 %v484_v59, 0.0 }
 0x120   :  { %v488_v63 = vadd.f32 %v487_v61, %v109_v54  ;;  %v489_v1 = vpop.f32.mrb[3].mxu1  ;;  %v401_v2 = vadd.f32 %v400_v0, %v109_v54 }
 0x121   :  { %v490_v3 = vadd.f32 %v489_v1, %v109_v54  ;;  %v508_v7 = vmax.f32 %v399_v62, 0.0  ;;  %v531_v54 = vpop.permute.xlu0 %530 }
 0x122   :  { %v510_v8 = vmax.f32 %v488_v63, 0.0  ;;  %v509_v11 = vmax.f32 %v401_v2, 0.0  ;;  %v404_v13 = vpop.f32.mrb[4].mxu0 }
 0x123   :  { %v511_v12 = vmax.f32 %v490_v3, 0.0  ;;  %v493_v14 = vpop.f32.mrb[4].mxu1  ;;  %v1247_v15 = vpack.c.bf16 %v508_v7, %v504_v4  ;;  %v406_v17 = vpop.f32.mrb[5].mxu0  ;;  %v405_v22 = vadd.f32 %v404_v13, %v114_v55 }
 0x124   :  { %v1255_v16 = vpack.c.bf16 %v510_v8, %v506_v6  ;;  %v495_v18 = vpop.f32.mrb[5].mxu1  ;;  %v1245_v19 = vpack.c.bf16 %v509_v11, %v505_v9  ;;  %v494_v23 = vadd.f32 %v493_v14, %v114_v55  ;;  %v407_v24 = vadd.f32 %v406_v17, %v114_v55 }
 0x125   :  { %v1253_v20 = vpack.c.bf16 %v511_v12, %v507_v10  ;;  %v496_v25 = vadd.f32 %v495_v18, %v114_v55  ;;  %v512_v34 = vmax.f32 %v405_v22, 0.0  ;;  %v536_v55 = vpop.permute.xlu1 %535  ;;  %v541_v18 = vpop.permute.xlu0 %540 }
 0x126   :  { %v410_v26 = vpop.f32.mrb[6].mxu0  ;;  %1246 = vmatprep.subr.bf16.mxu0 %v1245_v19  ;;  %v514_v35 = vmax.f32 %v494_v23, 0.0  ;;  %v513_v38 = vmax.f32 %v407_v24, 0.0 }
 0x127   :  { %v499_v27 = vpop.f32.mrb[6].mxu1  ;;  %1254 = vmatprep.subr.bf16.mxu1 %v1253_v20  ;;  %v411_v28 = vadd.f32 %v410_v26, %v119_v21  ;;  %v412_v30 = vpop.f32.mrb[7].mxu0  ;;  %1248 = vmatpush1.bf16.msra.mxu0 %v1247_v15  ;;  %v515_v39 = vmax.f32 %v496_v25, 0.0 }
 0x128   :  { %v500_v29 = vadd.f32 %v499_v27, %v119_v21  ;;  %v501_v31 = vpop.f32.mrb[7].mxu1  ;;  %1256 = vmatpush1.bf16.msra.mxu1 %v1255_v16  ;;  %v413_v32 = vadd.f32 %v412_v30, %v119_v21 }
 0x129   :  { %v502_v33 = vadd.f32 %v501_v31, %v119_v21  ;;  %v516_v36 = vmax.f32 %v411_v28, 0.0  ;;  %v546_v21 = vpop.permute.xlu1 %545 }
 0x12a   :  { %v518_v37 = vmax.f32 %v500_v29, 0.0  ;;  %v517_v40 = vmax.f32 %v413_v32, 0.0 }
 0x12b   :  { %v519_v41 = vmax.f32 %v502_v33, 0.0  ;;  %v1251_v42 = vpack.c.bf16 %v516_v36, %v512_v34 }
 0x12c   :  { %v1259_v43 = vpack.c.bf16 %v518_v37, %v514_v35  ;;  %v1249_v44 = vpack.c.bf16 %v517_v40, %v513_v38 }
 0x12d   :  { %v1257_v45 = vpack.c.bf16 %v519_v41, %v515_v39 }
 0x12e   :  { %1250 = vmatprep.subr.bf16.mxu0 %v1249_v44 }
 0x12f   :  { %1258 = vmatprep.subr.bf16.mxu1 %v1257_v45  ;;  %1252 = vmatpush1.bf16.msra.mxu0 %v1251_v42 }
 0x130   :  { %1260 = vmatpush1.bf16.msra.mxu1 %v1259_v43 }
 0x132   :  { %1055 = vmatmul.mubr.msk.f32.vlgmr.msra.gmra.mrb[8].mxu0 %vm548_vm2, %v520_v46 }
 0x133   :  { %1059 = vmatmul.mubr.msk.f32.vlgmr.msra.gmra.mrb[8].mxu1 %vm548_vm2, %v520_v46  ;;  %631 = vmatprep.mubr.f32.mxu0 %v1324_v48  ;;  %v755_v46 = vld [vmem:[%s1742_s5] sm:$0x1]  ;;  %s1326_s5 = smov [#allocation3]  }
 0x134   :  { %720 = vmatprep.mubr.f32.mxu1 %v1324_v48  ;;  %s975_s12 = sshll.u32 %s1326_s5, 4  ;;  %s976_s12 = int_to_ptr.vmem [resolvable:$true] %s975_s12 }
 0x135   :  { %s1299_s13 = scalar_lea.vmem %s976_s12, 64  ;;  %p1304_p1 = scmp.lt.s32.totalorder %s976_s12, %s976_s12 }
 0x136   :  { %1056 = vmatmul.mubr.msk.f32.gmra.mrb[10].mxu0 %vm548_vm2, %v521_v47  ;;  %p1300_p0 = scmp.ne.s32.totalorder %s976_s12, %s1299_s13  ;;  %p1305_p2 = scmp.lt.s32.totalorder %s1299_s13, %s1299_s13 }
 0x137   :  { %1060 = vmatmul.mubr.msk.f32.gmra.mrb[10].mxu1 %vm548_vm2, %v521_v47  ;;  %637 = vmatprep.mubr.f32.mxu0 %v1324_v48  ;;  %v762_v47 = vlaneseq }
 0x138   :  { %726 = vmatprep.mubr.f32.mxu1 %v1324_v48  ;;  %p1306_p3 = por %p1305_p2, %p1304_p1 }
 0x139   :  { %vm966_vm3 = vcmp.lt.s32.totalorder %v762_v47, 512 }
 0x13a   :  { %1057 = vmatmul.mubr.msk.f32.gmra.mrb[12].mxu0 %vm548_vm2, %v522_v5  ;;  %p1307_p4 = pnand %p1306_p3, %p1300_p0 }
 0x13b   :  { %1061 = vmatmul.mubr.msk.f32.gmra.mrb[12].mxu1 %vm548_vm2, %v522_v5  ;;  %643 = vmatprep.mubr.f32.mxu0 %v1324_v48  ;;  %v763_v5 = vshrl.u32 %v762_v47, 7 }
 0x13c   :  { %732 = vmatprep.mubr.f32.mxu1 %v1324_v48 }
 0x13e   :  { %1058 = vmatmul.mubr.msk.f32.gmra.mrb[14].mxu0 %vm548_vm2, %v523_v49 }
 0x13f   :  { %1062 = vmatmul.mubr.msk.f32.gmra.mrb[14].mxu1 %vm548_vm2, %v523_v49  ;;  %833 = vmatprep.mubr.f32.mxu0 %v1324_v48  ;;  %v764_v49 = vsub.s32 0, %v763_v5 }
 0x140   :  { %904 = vmatprep.mubr.f32.mxu1 %v1324_v48 }
 0x205   :  { %v627_v50 = vpop.f32.mrb[8].mxu0 }
 0x206   :  { %v716_v51 = vpop.f32.mrb[8].mxu1  ;;  %v629_v52 = vpop.f32.mrb[9].mxu0  ;;  %v628_v56 = vadd.f32 %v627_v50, %v531_v54 }
 0x207   :  { %v718_v53 = vpop.f32.mrb[9].mxu1  ;;  %v717_v57 = vadd.f32 %v716_v51, %v531_v54  ;;  %v630_v58 = vadd.f32 %v629_v52, %v531_v54  ;;  %v760_v50 = vpop.permute.xlu0 %759 }
 0x208   :  { %v719_v59 = vadd.f32 %v718_v53, %v531_v54  ;;  %v739_v4 = vmax.f32 %v628_v56, 0.0  ;;  %v765_v51 = vrot.slane %v760_v50, %v764_v49 }
 0x209   :  { %v633_v60 = vpop.f32.mrb[10].mxu0  ;;  %v741_v48 = vmax.f32 %v717_v57, 0.0  ;;  %v740_v8 = vmax.f32 %v630_v58, 0.0 }
 0x20a   :  { %v722_v61 = vpop.f32.mrb[10].mxu1  ;;  %v634_v62 = vadd.f32 %v633_v60, %v536_v55  ;;  %v635_v0 = vpop.f32.mrb[11].mxu0  ;;  %v742_v9 = vmax.f32 %v719_v59, 0.0 }
 0x20b   :  { %v723_v63 = vadd.f32 %v722_v61, %v536_v55  ;;  %v724_v1 = vpop.f32.mrb[11].mxu1  ;;  %v636_v2 = vadd.f32 %v635_v0, %v536_v55 }
 0x20c   :  { %v725_v3 = vadd.f32 %v724_v1, %v536_v55  ;;  %v743_v6 = vmax.f32 %v634_v62, 0.0 }
 0x20d   :  { %v745_v7 = vmax.f32 %v723_v63, 0.0  ;;  %v744_v10 = vmax.f32 %v636_v2, 0.0  ;;  %v639_v12 = vpop.f32.mrb[12].mxu0 }
 0x20e   :  { %v746_v11 = vmax.f32 %v725_v3, 0.0  ;;  %v728_v13 = vpop.f32.mrb[12].mxu1  ;;  %v1263_v14 = vpack.c.bf16 %v743_v6, %v739_v4  ;;  %v641_v16 = vpop.f32.mrb[13].mxu0  ;;  %v640_v22 = vadd.f32 %v639_v12, %v541_v18 }
 0x20f   :  { %v1271_v15 = vpack.c.bf16 %v745_v7, %v741_v48  ;;  %v730_v17 = vpop.f32.mrb[13].mxu1  ;;  %v1261_v19 = vpack.c.bf16 %v744_v10, %v740_v8  ;;  %v729_v23 = vadd.f32 %v728_v13, %v541_v18  ;;  %v642_v24 = vadd.f32 %v641_v16, %v541_v18 }
 0x210   :  { %v1269_v20 = vpack.c.bf16 %v746_v11, %v742_v9  ;;  %v731_v25 = vadd.f32 %v730_v17, %v541_v18  ;;  %v747_v34 = vmax.f32 %v640_v22, 0.0  ;;  %v1325_v8 = vmov 1966171168  }
 0x211   :  { %v645_v26 = vpop.f32.mrb[14].mxu0  ;;  %1262 = vmatprep.subr.bf16.mxu0 %v1261_v19  ;;  %v749_v35 = vmax.f32 %v729_v23, 0.0  ;;  %v748_v38 = vmax.f32 %v642_v24, 0.0  ;;  %v942_v9 = vunpack.c.l.s4 %v1325_v8 }
 0x212   :  { %v734_v27 = vpop.f32.mrb[14].mxu1  ;;  %1270 = vmatprep.subr.bf16.mxu1 %v1269_v20  ;;  %v646_v28 = vadd.f32 %v645_v26, %v546_v21  ;;  %v647_v30 = vpop.f32.mrb[15].mxu0  ;;  %1264 = vmatpush1.bf16.msra.mxu0 %v1263_v14  ;;  %v750_v39 = vmax.f32 %v731_v25, 0.0 }
 0x213   :  { %v735_v29 = vadd.f32 %v734_v27, %v546_v21  ;;  %v736_v31 = vpop.f32.mrb[15].mxu1  ;;  %1272 = vmatpush1.bf16.msra.mxu1 %v1271_v15  ;;  %v648_v32 = vadd.f32 %v647_v30, %v546_v21  ;;  %v943_v10 = vunpack.c.0.s8 %v942_v9 }
 0x214   :  { %v737_v33 = vadd.f32 %v736_v31, %v546_v21  ;;  %v751_v36 = vmax.f32 %v646_v28, 0.0 }
 0x215   :  { %v753_v37 = vmax.f32 %v735_v29, 0.0  ;;  %v752_v40 = vmax.f32 %v648_v32, 0.0  ;;  %v946_v13 = vsub.s32 %v943_v10, %v763_v5 }
 0x216   :  { %v754_v41 = vmax.f32 %v737_v33, 0.0  ;;  %v1267_v42 = vpack.c.bf16 %v751_v36, %v747_v34 }
 0x217   :  { %v1275_v43 = vpack.c.bf16 %v753_v37, %v749_v35  ;;  %v1265_v44 = vpack.c.bf16 %v752_v40, %v748_v38 }
 0x218   :  { %v1273_v45 = vpack.c.bf16 %v754_v41, %v750_v39 }
 0x219   :  { %1266 = vmatprep.subr.bf16.mxu0 %v1265_v44 }
 0x21a   :  { %1274 = vmatprep.subr.bf16.mxu1 %v1273_v45  ;;  %1268 = vmatpush1.bf16.msra.mxu0 %v1267_v42 }
 0x21b   :  { %1276 = vmatpush1.bf16.msra.mxu1 %v1275_v43 }
 0x21d   :  { %1063 = vmatmul.mubr.msk.f32.vlgmr.msra.gmra.mrb[16].mxu0 %vm548_vm2, %v755_v46 }
 0x21e   :  { %1064 = vmatmul.mubr.msk.f32.vlgmr.msra.gmra.mrb[16].mxu1 %vm548_vm2, %v755_v46 }
 0x2f0   :  { %v835_v52 = vpop.f32.mrb[16].mxu0 }
 0x2f1   :  { %v906_v53 = vpop.f32.mrb[16].mxu1  ;;  %v836_v54 = vadd.f32 %v835_v52, %v765_v51  ;;  %v837_v56 = vpop.f32.mrb[17].mxu0 }
 0x2f2   :  { %v907_v55 = vadd.f32 %v906_v53, %v765_v51  ;;  %v908_v57 = vpop.f32.mrb[17].mxu1  ;;  %v838_v58 = vadd.f32 %v837_v56, %v765_v51 }
 0x2f3   :  { %v909_v59 = vadd.f32 %v908_v57, %v765_v51  ;;  %v1065_v60 = vmul.f32 -1.442695, %v836_v54 }
 0x2f4   :  { %v1067_v61 = vmul.f32 -1.442695, %v907_v55  ;;  %v1066_v62 = vmul.f32 -1.442695, %v838_v58 }
 0x2f5   :  { %v1068_v63 = vmul.f32 -1.442695, %v909_v59  ;;  %1283 = vpow2.f32 %v1065_v60 }
 0x2f6   :  { %1285 = vpow2.f32 %v1067_v61 }
 0x2f7   :  { %1287 = vpow2.f32 %v1066_v62 }
 0x2f8   :  { %1289 = vpow2.f32 %v1068_v63 }
 0x2ff   :  { %v1284_v0 = vpop.eup %1283 }
 0x300   :  { %v1286_v1 = vpop.eup %1285  ;;  %v923_v2 = vadd.f32 1.0, %v1284_v0 }
 0x301   :  { %v1288_v3 = vpop.eup %1287  ;;  %v925_v4 = vadd.f32 1.0, %v1286_v1 }
 0x302   :  { %v1290_v48 = vpop.eup %1289  ;;  %1291 = vrcp.f32 %v923_v2  ;;  %v924_v6 = vadd.f32 1.0, %v1288_v3 }
 0x303   :  { %1293 = vrcp.f32 %v925_v4  ;;  %v926_v7 = vadd.f32 1.0, %v1290_v48 }
 0x304   :  { %1295 = vrcp.f32 %v924_v6 }
 0x305   :  { %1297 = vrcp.f32 %v926_v7 }
 0x30c   :  { %v1292_v11 = vpop.eup %1291 }
 0x30d   :  { %v1294_v12 = vpop.eup %1293 }
 0x30e   :  { %v1296_v14 = vpop.eup %1295 }
 0x30f   :  { %v1298_v15 = vpop.eup %1297  ;;  %v939_v16 = vcombine.low %v1292_v11, %v1296_v14 }
 0x310   :  { %v940_v17 = vcombine.low %v1294_v12, %v1298_v15 }
 0x311   :  { %v947_v18 = vrot.slane %v939_v16, %v946_v13 }
 0x312   :  { %v954_v19 = vrot.slane %v940_v17, %v946_v13 }
 0x314   :  { %v955_v20 = vcombine.low %v947_v18, %v954_v19 }
 0x316   :  { %v962_v21 = vrot.slane %v955_v20, %v946_v13 }
 0x318   :  { %968 = vst.msk [vmem:[#allocation3] sm:$0xf] %vm966_vm3, %v962_v21 }
 0x319   :  { %1310 = shalt.err (!%p1307_p4)
}
 0x31a   :  { %s1311_s15 = scalar_lea.hbm %s1744_s7, 64 }
 0x31b   :  { %p1312_p5 = scmp.ne.s32.totalorder %s1744_s7, %s1311_s15  ;;  %p1315_p6 = scmp.lt.u32.totalorder %s1311_s15, %s1744_s7 }
 0x31d   :  { %p1317_p7 = pnand %p1315_p6, %p1312_p5 }
 0x31f   :  { %1320 = shalt.err (!%p1317_p7)
}
 0x320   :  { %978 = dma.vmem_to_hbm [thread:$0]  %s976_s12, 64, %s1744_s7, [#allocation4]  }
 0x321   :  { %1321 = dma.done.wait [#allocation4], 64  }
 0x322   :  { %1322 = vsyncadd [#allocation4], 4294967232 }
 0x323   :  { %982 = vsyncpa [#allocation4], 1 }

</bundles_post_ra>
